<compile_context>
chip_gen: v6e
topology: v6e:2x2x1
jax: 0.10.0
libtpu: 0.0.40
codegen_flags: <defaults>
</compile_context>

<pallas_src>
import jax
import jax.numpy as jnp
from jax.experimental import pallas as pl
from jax.experimental.pallas import tpu as pltpu


# ----------------------------------------------------------------------------
# Deterministic parameter initialization (shapes from MyModel.__init__).
# These parameters are intentionally unused in forward(), matching PyTorch.
# ----------------------------------------------------------------------------
def init_params(key):
    k1, k2, k3, k4 = jax.random.split(key, 4)
    return {
        "fc_w": jax.random.normal(k1, (10, 10), jnp.float32) * 0.1,
        "fc_b": jax.random.normal(k2, (10,), jnp.float32) * 0.1,
        "non_fc_w": jax.random.normal(k3, (1, 1), jnp.float32) * 0.1,
        "non_fc_b": jax.random.normal(k4, (1,), jnp.float32) * 0.1,
    }


# ----------------------------------------------------------------------------
# Pallas kernel: block-wise identity copy.
# ----------------------------------------------------------------------------
def _copy_kernel(x_ref, o_ref):
    o_ref[...] = x_ref[...]


def identity_copy_pallas(x, *, tile_bytes=2 << 20):
    """Pallas identity copy (fusion/donation point only).

    Lane-dense re-layout + cdiv row-block grid with full last dim, so any
    shape is legal and VMEM usage stays bounded (~2 MiB/block by default,
    8 MiB total with double-buffered in+out -> safe on v5e/v6e/v7x scoped
    defaults without touching vmem_limit_bytes).
    """
    orig_shape = x.shape
    total = int(x.size)
    itemsize = jnp.dtype(x.dtype).itemsize

    # --- Lane-dense re-layout: prefer a wide, 128-multiple last dim. -------
    L = None
    for cand in (4096, 2048, 1024, 512, 256, 128):
        if total % cand == 0:
            L = cand
            break
    if L is not None:
        x2 = x.reshape(total // L, L)
    else:
        # Small / irregular totals: keep the natural trailing dim (may be
        # lane-sparse; only tiny arrays land here, where the copy is launch-
        # overhead-dominated anyway).
        if x.ndim >= 2:
            x2 = x.reshape(-1, orig_shape[-1])
        else:
            x2 = x.reshape(1, -1)
    M, N = x2.shape

    # --- Row-block size: ~tile_bytes per block, multiple of 8 sublanes. ----
    rows = max(1, tile_bytes // max(1, N * itemsize))
    tm = (rows // 8) * 8
    if tm < 8 or tm >= M:
        tm = M  # full dim is always legal (and covers M < 8)
    grid_m = pl.cdiv(M, tm)  # ragged last block is masked by Pallas

    spec = pl.BlockSpec((tm, N), lambda i: (i, 0))
    out = pl.pallas_call(
        _copy_kernel,
        out_shape=jax.ShapeDtypeStruct((M, N), x2.dtype),
        grid=(grid_m,),
        in_specs=[spec],
        out_specs=spec,
        compiler_params=pltpu.CompilerParams(
            dimension_semantics=("parallel",)),
        cost_estimate=pl.CostEstimate(
            flops=0,
            transcendentals=0,
            bytes_accessed=2 * total * itemsize),
    )(x2)

    return out.reshape(orig_shape)


# ----------------------------------------------------------------------------
# Forward pass of MyModel: identity.  Default (and recommended) path emits no
# kernel at all.  Set use_pallas_copy=True only when an explicit fusion point
# is required.
# ----------------------------------------------------------------------------
def my_model_forward(x, params=None, *, use_pallas_copy=False):
    del params  # MyModel.forward ignores its parameters.
    if use_pallas_copy:
        return identity_copy_pallas(x)
    return x


if __name__ == "__main__":
    key = jax.random.PRNGKey(0)
    pkey, xkey, bkey = jax.random.split(key, 3)

    params = init_params(pkey)  # deterministic, unused (matches PyTorch)

    # Input consistent with the module (Linear(10, 10) -> feature dim 10).
    x = jax.random.normal(xkey, (2, 10), jnp.float32)

    # 1) Recommended forward: no kernel at all.
    y = my_model_forward(x, params)
    jax.block_until_ready(y)
    assert y.shape == x.shape and y.dtype == x.dtype
    assert jnp.array_equal(y, x), "forward identity mismatch"

    # 2) Pallas fusion-point form, small lane-sparse fallback path
    #    (total=20 not a multiple of 128 -> natural (2,10) view, cdiv grid).
    y_k = my_model_forward(x, params, use_pallas_copy=True)
    jax.block_until_ready(y_k)
    assert jnp.array_equal(y_k, x), "pallas identity (small) mismatch"

    # 3) Pallas fusion-point form, lane-dense re-layout path
    #    ((512,1024) f32 -> viewed as (128, 4096), single 2 MiB block).
    x_big = jax.random.normal(bkey, (512, 1024), jnp.float32)
    y_big = identity_copy_pallas(x_big)
    jax.block_until_ready(y_big)
    assert jnp.array_equal(y_big, x_big), "pallas identity (lane-dense) mismatch"

    # 4) Multi-step cdiv grid with a ragged last row-block (forced small
    #    tile_bytes so the masked-edge path is exercised on small data):
    #    (600,256) f32 -> viewed as (75, 2048), tm=8 -> grid=10, last block=3 rows.
    x_rag = jax.random.normal(bkey, (600, 256), jnp.float32)
    y_rag = identity_copy_pallas(x_rag, tile_bytes=64 * 1024)
    jax.block_until_ready(y_rag)
    assert jnp.array_equal(y_rag, x_rag), "pallas identity (ragged grid) mismatch"

    print("KERNEL_OK")
</pallas_src>

<mosaic_0001>
module attributes {stable_mosaic.version = 11 : i64} {
  func.func @_copy_kernel(%arg0: i32, %arg1: memref<2x10xf32, #tpu.memory_space<vmem>>, %arg2: memref<2x10xf32, #tpu.memory_space<vmem>>) attributes {dimension_semantics = [#tpu.dimension_semantics<parallel>], iteration_bounds = array<i64: 1>, scalar_prefetch = 0 : i64, scratch_operands = 0 : i64, tpu.core_type = #tpu.core_type<tc>, window_params = [{transform_indices = @transform_0, window_bounds = array<i64: 2, 10>}, {transform_indices = @transform_1, window_bounds = array<i64: 2, 10>}]} {
    %c0 = arith.constant 0 : index
    %c0_0 = arith.constant 0 : index
    %0 = vector.load %arg1[%c0, %c0_0] : memref<2x10xf32, #tpu.memory_space<vmem>>, vector<2x10xf32>
    %c0_1 = arith.constant 0 : index
    %c0_2 = arith.constant 0 : index
    %1 = vector.load %arg2[%c0_1, %c0_2] : memref<2x10xf32, #tpu.memory_space<vmem>>, vector<2x10xf32>
    tpu.vector_store %arg2[%c0_1, %c0_2], %0 {strides = array<i32>} : memref<2x10xf32, #tpu.memory_space<vmem>>, vector<2x10xf32>,
    return
  }
  func.func @transform_0(%arg0: i32) -> (i32, i32) {
    %c0_i32 = arith.constant 0 : i32
    %c0_i32_0 = arith.constant 0 : i32
    return %arg0, %c0_i32 : i32, i32
  }
  func.func @transform_1(%arg0: i32) -> (i32, i32) {
    %c0_i32 = arith.constant 0 : i32
    %c0_i32_0 = arith.constant 0 : i32
    return %arg0, %c0_i32 : i32, i32
  }
}

</mosaic_0001>

<bundles_post_ra>
// kernel: tpu_custom_call.1
= control target key start
LH: loop header
LB: loop body
LE: loop exit
PB: predicated region body
PF: predicated region fallthrough
CT: control target
= control target key end

     0   :  { %6 = vsyncpa [#allocation3], 0  ;;  %s103_s0 = inlined_call_operand.hbm [shape: f32[2,10], index: 0, kind: input, shape index: {}]   ;;  %s104_s1 = inlined_call_operand.hbm [shape: f32[2,10], index: 1, kind: output, shape index: {}]  }
   0x1   :  { %7 = vsyncpa [#allocation4], 0  ;;  %s85_s6 = smov [#allocation2]  }
   0x2   :  { %s14_s7 = sshll.u32 %s85_s6, 4  ;;  %s15_s7 = int_to_ptr.vmem [resolvable:$true] %s14_s7 }
   0x3   :  { %s49_s8 = scalar_lea.vmem %s15_s7, 32  ;;  %p54_p1 = scmp.lt.s32.totalorder %s15_s7, %s15_s7 }
   0x4   :  { %p50_p0 = scmp.ne.s32.totalorder %s15_s7, %s49_s8  ;;  %p55_p2 = scmp.lt.s32.totalorder %s49_s8, %s49_s8 }
   0x6   :  { %p56_p3 = por %p55_p2, %p54_p1 }
   0x8   :  { %p57_p4 = pnand %p56_p3, %p50_p0 }
   0xa   :  { %60 = shalt.err (!%p57_p4)
}
   0xb   :  { %17 = dma.hbm_to_vmem [thread:$0]  %s103_s0, 32, %s15_s7, [#allocation3]  }
   0xc   :  { %81 = dma.done.wait [#allocation3], 32  }
   0xd   :  { %82 = vsyncadd [#allocation3], 4294967264  ;;  %s86_s11 = smov [#allocation5]   ;;  %vm22_vm0 = vcmask 74752   ;;  %v21_v0 = vld [vmem:[#allocation2] sm:$0x3] }
   0xe   :  { %s30_s12 = sshll.u32 %s86_s11, 4  ;;  %23 = vst.msk [vmem:[#allocation5] sm:$0x3] %vm22_vm0, %v21_v0  ;;  %s31_s12 = int_to_ptr.vmem [resolvable:$true] %s30_s12 }
   0xf   :  { %s61_s13 = scalar_lea.vmem %s31_s12, 32  ;;  %p66_p6 = scmp.lt.s32.totalorder %s31_s12, %s31_s12 }
  0x10   :  { %p62_p5 = scmp.ne.s32.totalorder %s31_s12, %s61_s13  ;;  %p67_p7 = scmp.lt.s32.totalorder %s61_s13, %s61_s13 }
  0x12   :  { %p68_p8 = por %p67_p7, %p66_p6 }
  0x14   :  { %p69_p9 = pnand %p68_p8, %p62_p5 }
  0x16   :  { %72 = shalt.err (!%p69_p9)
}
  0x17   :  { %33 = dma.vmem_to_hbm [thread:$0]  %s31_s12, 32, %s104_s1, [#allocation4]  }
  0x18   :  { %83 = dma.done.wait [#allocation4], 32  }
  0x19   :  { %84 = vsyncadd [#allocation4], 4294967264 }
  0x1a   :  { %37 = vsyncpa [#allocation3], 1 }
  0x1b   :  { %38 = vsyncpa [#allocation4], 1 }

</bundles_post_ra>
